<compile_context>
chip_gen: v7x
topology: tpu7x:2x2x1
jax: 0.10.0
libtpu: 0.0.40
codegen_flags: <defaults>
</compile_context>

<pallas_src>
import jax
import jax.numpy as jnp
from jax.experimental import pallas as pl
from jax.experimental.pallas import tpu as pltpu


def _round_up(x, m):
    return (x + m - 1) // m * m


def rnn_kernel(tok_ref, proj_ref, whh_ref, wfc_ref, bfc_ref, out_ref, xslab_ref):
    """Embedding gather + tanh-RNN recurrence + final linear, single invocation.

    tok_ref   : (B, T)      int32, SMEM   token ids
    proj_ref  : (V, 1, Hp)  f32,   VMEM   emb @ W_ih^T + (b_ih + b_hh), zero-padded H lanes
    whh_ref   : (Hp, Hp)    f32,   VMEM   W_hh^T, zero-padded
    wfc_ref   : (Hp, Op)    f32,   VMEM   W_fc^T, zero-padded
    bfc_ref   : (1, Op)     f32,   VMEM   b_fc,   zero-padded
    out_ref   : (Bp, Op)    f32,   VMEM
    xslab_ref : (T, Bp, Hp) f32,   VMEM scratch holding the in-kernel gathered x-projections
    """
    B, T = tok_ref.shape
    _, Bp, Hp = xslab_ref.shape

    # ---- in-kernel gather (replaces XLA gather + x_proj HBM round trip) ----------
    # Zero once: padded H lanes must be 0 for the tanh recurrence; padded batch rows
    # then stay exactly 0 too (rows never mix through h @ W_hh^T, so this is strictly
    # tidier than required).
    xslab_ref[...] = jnp.zeros_like(xslab_ref)
    for t in range(T):                      # static loops: T, B are tiny here
        for b in range(B):
            xslab_ref[t, pl.ds(b, 1), :] = proj_ref[tok_ref[b, t]]
    # TODO(synk): for production T, run this gather inside a fori_loop / pipeline it
    #             against the recurrence instead of fully unrolling in Python.

    # ---- serial recurrence: h_t = tanh(x_proj[t] + h_{t-1} @ W_hh^T) -------------
    whh = whh_ref[...]                      # recurrent weights resident across the loop

    def step(t, h):
        return jnp.tanh(
            xslab_ref[t] + jnp.dot(h, whh, preferred_element_type=jnp.float32)
        )

    h0 = jnp.zeros((Bp, Hp), jnp.float32)
    h_last = jax.lax.fori_loop(0, T, step, h0, unroll=min(T, 8))

    # ---- final linear on the last hidden state (lane-dense output) ---------------
    out_ref[...] = (
        jnp.dot(h_last, wfc_ref[...], preferred_element_type=jnp.float32)
        + bfc_ref[...]
    ).astype(out_ref.dtype)


def prepare_kernel_params(params):
    """One-time fold + pad: the per-call forward then launches no weight-side XLA ops."""
    emb = params["embedding"]                                   # (V, H)
    V, H = emb.shape
    O = params["w_fc_t"].shape[1]
    Hp = _round_up(H, 128)                                      # lane alignment
    Op = _round_up(O, 128)                                      # lane-dense output

    # Fold input projection + fused bias into the (tiny-V) embedding table.
    proj = emb @ params["w_ih_t"] + params["b"]                 # (V, H)
    proj = jnp.pad(proj, ((0, 0), (0, Hp - H)))                 # zero pad lanes
    proj = proj.reshape(V, 1, Hp)                               # leading-dim gather layout

    return {
        "proj_table": proj,                                                   # (V, 1, Hp)
        "whh_pad": jnp.pad(params["w_hh_t"], ((0, Hp - H), (0, Hp - H))),     # (Hp, Hp)
        "wfc_pad": jnp.pad(params["w_fc_t"], ((0, Hp - H), (0, Op - O))),     # (Hp, Op)
        "bfc_pad": jnp.pad(params["b_fc"], ((0, 0), (0, Op - O))),            # (1, Op)
        "out_features": O,
    }


def simple_rnn_forward(x_tokens, kparams):
    """x_tokens: (B, T) int32.  kparams from prepare_kernel_params.  Returns (B, O) f32."""
    B, T = x_tokens.shape
    Hp = kparams["whh_pad"].shape[0]
    Op = kparams["wfc_pad"].shape[1]
    O = kparams["out_features"]
    Bp = _round_up(B, 8)                    # sublane alignment

    smem = pl.BlockSpec(memory_space=pltpu.MemorySpace.SMEM)
    vmem = pl.BlockSpec(memory_space=pltpu.MemorySpace.VMEM)

    out_pad = pl.pallas_call(
        rnn_kernel,
        out_shape=jax.ShapeDtypeStruct((Bp, Op), jnp.float32),
        in_specs=[smem, vmem, vmem, vmem, vmem],
        out_specs=vmem,
        scratch_shapes=[pltpu.VMEM((T, Bp, Hp), jnp.float32)],
        compiler_params=pltpu.CompilerParams(
            # Explicit scoped-VMEM budget: raises v5e's 16 MiB default, matches the
            # v6e/v7x default, well under all physical limits for this slab size.
            vmem_limit_bytes=32 * 1024 * 1024,
        ),
    )(
        x_tokens.astype(jnp.int32),
        kparams["proj_table"],
        kparams["whh_pad"],
        kparams["wfc_pad"],
        kparams["bfc_pad"],
    )
    return out_pad[:B, :O]


def init_params(key, input_size, hidden_size, output_size):
    """Deterministic parameter init (uniform, PyTorch-ish scales)."""
    k = jax.random.split(key, 7)
    H, V, O = hidden_size, input_size, output_size
    s = 1.0 / jnp.sqrt(H)
    emb = jax.random.normal(k[0], (V, H), jnp.float32)
    w_ih = jax.random.uniform(k[1], (H, H), jnp.float32, -s, s)   # nn.RNN weight_ih_l0
    w_hh = jax.random.uniform(k[2], (H, H), jnp.float32, -s, s)   # nn.RNN weight_hh_l0
    b_ih = jax.random.uniform(k[3], (H,), jnp.float32, -s, s)
    b_hh = jax.random.uniform(k[4], (H,), jnp.float32, -s, s)
    w_fc = jax.random.uniform(k[5], (O, H), jnp.float32, -s, s)   # nn.Linear weight
    b_fc = jax.random.uniform(k[6], (O,), jnp.float32, -s, s)
    return {
        "embedding": emb,
        "w_ih_t": w_ih.T,
        "w_hh_t": w_hh.T,
        "b": (b_ih + b_hh).reshape(1, H),
        "w_fc_t": w_fc.T,
        "b_fc": b_fc.reshape(1, O),
    }


def reference_forward(x_tokens, params):
    """Pure-JAX reference mirroring the PyTorch module."""
    x_emb = params["embedding"][x_tokens]                     # (B, T, H)
    B, T, H = x_emb.shape

    def step(h, x_t):
        h_new = jnp.tanh(x_t @ params["w_ih_t"] + h @ params["w_hh_t"] + params["b"])
        return h_new, None

    h0 = jnp.zeros((B, H), jnp.float32)
    h_last, _ = jax.lax.scan(step, h0, jnp.transpose(x_emb, (1, 0, 2)))
    return h_last @ params["w_fc_t"] + params["b_fc"]


if __name__ == "__main__":
    INPUT_SIZE = 16    # vocab
    HIDDEN_SIZE = 32
    OUTPUT_SIZE = 8
    B, T = 2, 8

    key = jax.random.PRNGKey(0)
    k_tok, k_par = jax.random.split(key)
    x_tokens = jax.random.randint(k_tok, (B, T), 0, INPUT_SIZE, dtype=jnp.int32)
    params = init_params(k_par, INPUT_SIZE, HIDDEN_SIZE, OUTPUT_SIZE)
    kparams = prepare_kernel_params(params)          # one-time fold + pad (not per-call)

    out = simple_rnn_forward(x_tokens, kparams)
    out = jax.block_until_ready(out)

    ref = jax.block_until_ready(reference_forward(x_tokens, params))
    assert out.shape == (B, OUTPUT_SIZE)
    assert jnp.allclose(out, ref, atol=1e-5, rtol=1e-5), "mismatch vs pure-JAX reference"

    print("KERNEL_OK")
</pallas_src>

<mosaic_0001>
module attributes {stable_mosaic.version = 11 : i64} {
  func.func @rnn_kernel(%arg0: memref<2x8xi32, #tpu.memory_space<smem>>, %arg1: memref<16x1x128xf32, #tpu.memory_space<vmem>>, %arg2: memref<128x128xf32, #tpu.memory_space<vmem>>, %arg3: memref<128x128xf32, #tpu.memory_space<vmem>>, %arg4: memref<1x128xf32, #tpu.memory_space<vmem>>, %arg5: memref<8x128xf32, #tpu.memory_space<vmem>>, %arg6: memref<8x8x128xf32, #tpu.memory_space<vmem>>) attributes {dimension_semantics = [], scalar_prefetch = 0 : i64, scratch_operands = 1 : i64, tpu.core_type = #tpu.core_type<tc>} {
    %cst = arith.constant 0.000000e+00 : f32
    %0 = vector.broadcast %cst : f32 to vector<8x8x128xf32>
    %c0 = arith.constant 0 : index
    %c0_0 = arith.constant 0 : index
    %c0_1 = arith.constant 0 : index
    %1 = vector.load %arg6[%c0, %c0_0, %c0_1] : memref<8x8x128xf32, #tpu.memory_space<vmem>>, vector<8x8x128xf32>
    tpu.vector_store %arg6[%c0, %c0_0, %c0_1], %0 {strides = array<i32>} : memref<8x8x128xf32, #tpu.memory_space<vmem>>, vector<8x8x128xf32>,
    %c0_2 = arith.constant 0 : index
    %c0_3 = arith.constant 0 : index
    %2 = memref.load %arg0[%c0_2, %c0_3] : memref<2x8xi32, #tpu.memory_space<smem>>
    %3 = arith.index_cast %2 : i32 to index
    %c0_4 = arith.constant 0 : index
    %c0_5 = arith.constant 0 : index
    %4 = vector.load %arg1[%3, %c0_4, %c0_5] : memref<16x1x128xf32, #tpu.memory_space<vmem>>, vector<1x1x128xf32>
    %5 = vector.shape_cast %4 : vector<1x1x128xf32> to vector<1x128xf32>
    %c0_6 = arith.constant 0 : index
    %c0_7 = arith.constant 0 : index
    %c0_8 = arith.constant 0 : index
    %6 = vector.load %arg6[%c0_6, %c0_7, %c0_8] : memref<8x8x128xf32, #tpu.memory_space<vmem>>, vector<1x1x128xf32>
    %7 = vector.shape_cast %6 : vector<1x1x128xf32> to vector<1x128xf32>
    %8 = vector.shape_cast %5 : vector<1x128xf32> to vector<1x1x128xf32>
    tpu.vector_store %arg6[%c0_6, %c0_7, %c0_8], %8 {strides = array<i32>} : memref<8x8x128xf32, #tpu.memory_space<vmem>>, vector<1x1x128xf32>,
    %c1 = arith.constant 1 : index
    %c0_9 = arith.constant 0 : index
    %9 = memref.load %arg0[%c1, %c0_9] : memref<2x8xi32, #tpu.memory_space<smem>>
    %10 = arith.index_cast %9 : i32 to index
    %c0_10 = arith.constant 0 : index
    %c0_11 = arith.constant 0 : index
    %11 = vector.load %arg1[%10, %c0_10, %c0_11] : memref<16x1x128xf32, #tpu.memory_space<vmem>>, vector<1x1x128xf32>
    %12 = vector.shape_cast %11 : vector<1x1x128xf32> to vector<1x128xf32>
    %c0_12 = arith.constant 0 : index
    %c1_13 = arith.constant 1 : index
    %c0_14 = arith.constant 0 : index
    %13 = vector.load %arg6[%c0_12, %c1_13, %c0_14] : memref<8x8x128xf32, #tpu.memory_space<vmem>>, vector<1x1x128xf32>
    %14 = vector.shape_cast %13 : vector<1x1x128xf32> to vector<1x128xf32>
    %15 = vector.shape_cast %12 : vector<1x128xf32> to vector<1x1x128xf32>
    tpu.vector_store %arg6[%c0_12, %c1_13, %c0_14], %15 {strides = array<i32>} : memref<8x8x128xf32, #tpu.memory_space<vmem>>, vector<1x1x128xf32>,
    %c0_15 = arith.constant 0 : index
    %c1_16 = arith.constant 1 : index
    %16 = memref.load %arg0[%c0_15, %c1_16] : memref<2x8xi32, #tpu.memory_space<smem>>
    %17 = arith.index_cast %16 : i32 to index
    %c0_17 = arith.constant 0 : index
    %c0_18 = arith.constant 0 : index
    %18 = vector.load %arg1[%17, %c0_17, %c0_18] : memref<16x1x128xf32, #tpu.memory_space<vmem>>, vector<1x1x128xf32>
    %19 = vector.shape_cast %18 : vector<1x1x128xf32> to vector<1x128xf32>
    %c1_19 = arith.constant 1 : index
    %c0_20 = arith.constant 0 : index
    %c0_21 = arith.constant 0 : index
    %20 = vector.load %arg6[%c1_19, %c0_20, %c0_21] : memref<8x8x128xf32, #tpu.memory_space<vmem>>, vector<1x1x128xf32>
    %21 = vector.shape_cast %20 : vector<1x1x128xf32> to vector<1x128xf32>
    %22 = vector.shape_cast %19 : vector<1x128xf32> to vector<1x1x128xf32>
    tpu.vector_store %arg6[%c1_19, %c0_20, %c0_21], %22 {strides = array<i32>} : memref<8x8x128xf32, #tpu.memory_space<vmem>>, vector<1x1x128xf32>,
    %c1_22 = arith.constant 1 : index
    %c1_23 = arith.constant 1 : index
    %23 = memref.load %arg0[%c1_22, %c1_23] : memref<2x8xi32, #tpu.memory_space<smem>>
    %24 = arith.index_cast %23 : i32 to index
    %c0_24 = arith.constant 0 : index
    %c0_25 = arith.constant 0 : index
    %25 = vector.load %arg1[%24, %c0_24, %c0_25] : memref<16x1x128xf32, #tpu.memory_space<vmem>>, vector<1x1x128xf32>
    %26 = vector.shape_cast %25 : vector<1x1x128xf32> to vector<1x128xf32>
    %c1_26 = arith.constant 1 : index
    %c1_27 = arith.constant 1 : index
    %c0_28 = arith.constant 0 : index
    %27 = vector.load %arg6[%c1_26, %c1_27, %c0_28] : memref<8x8x128xf32, #tpu.memory_space<vmem>>, vector<1x1x128xf32>
    %28 = vector.shape_cast %27 : vector<1x1x128xf32> to vector<1x128xf32>
    %29 = vector.shape_cast %26 : vector<1x128xf32> to vector<1x1x128xf32>
    tpu.vector_store %arg6[%c1_26, %c1_27, %c0_28], %29 {strides = array<i32>} : memref<8x8x128xf32, #tpu.memory_space<vmem>>, vector<1x1x128xf32>,
    %c0_29 = arith.constant 0 : index
    %c2 = arith.constant 2 : index
    %30 = memref.load %arg0[%c0_29, %c2] : memref<2x8xi32, #tpu.memory_space<smem>>
    %31 = arith.index_cast %30 : i32 to index
    %c0_30 = arith.constant 0 : index
    %c0_31 = arith.constant 0 : index
    %32 = vector.load %arg1[%31, %c0_30, %c0_31] : memref<16x1x128xf32, #tpu.memory_space<vmem>>, vector<1x1x128xf32>
    %33 = vector.shape_cast %32 : vector<1x1x128xf32> to vector<1x128xf32>
    %c2_32 = arith.constant 2 : index
    %c0_33 = arith.constant 0 : index
    %c0_34 = arith.constant 0 : index
    %34 = vector.load %arg6[%c2_32, %c0_33, %c0_34] : memref<8x8x128xf32, #tpu.memory_space<vmem>>, vector<1x1x128xf32>
    %35 = vector.shape_cast %34 : vector<1x1x128xf32> to vector<1x128xf32>
    %36 = vector.shape_cast %33 : vector<1x128xf32> to vector<1x1x128xf32>
    tpu.vector_store %arg6[%c2_32, %c0_33, %c0_34], %36 {strides = array<i32>} : memref<8x8x128xf32, #tpu.memory_space<vmem>>, vector<1x1x128xf32>,
    %c1_35 = arith.constant 1 : index
    %c2_36 = arith.constant 2 : index
    %37 = memref.load %arg0[%c1_35, %c2_36] : memref<2x8xi32, #tpu.memory_space<smem>>
    %38 = arith.index_cast %37 : i32 to index
    %c0_37 = arith.constant 0 : index
    %c0_38 = arith.constant 0 : index
    %39 = vector.load %arg1[%38, %c0_37, %c0_38] : memref<16x1x128xf32, #tpu.memory_space<vmem>>, vector<1x1x128xf32>
    %40 = vector.shape_cast %39 : vector<1x1x128xf32> to vector<1x128xf32>
    %c2_39 = arith.constant 2 : index
    %c1_40 = arith.constant 1 : index
    %c0_41 = arith.constant 0 : index
    %41 = vector.load %arg6[%c2_39, %c1_40, %c0_41] : memref<8x8x128xf32, #tpu.memory_space<vmem>>, vector<1x1x128xf32>
    %42 = vector.shape_cast %41 : vector<1x1x128xf32> to vector<1x128xf32>
    %43 = vector.shape_cast %40 : vector<1x128xf32> to vector<1x1x128xf32>
    tpu.vector_store %arg6[%c2_39, %c1_40, %c0_41], %43 {strides = array<i32>} : memref<8x8x128xf32, #tpu.memory_space<vmem>>, vector<1x1x128xf32>,
    %c0_42 = arith.constant 0 : index
    %c3 = arith.constant 3 : index
    %44 = memref.load %arg0[%c0_42, %c3] : memref<2x8xi32, #tpu.memory_space<smem>>
    %45 = arith.index_cast %44 : i32 to index
    %c0_43 = arith.constant 0 : index
    %c0_44 = arith.constant 0 : index
    %46 = vector.load %arg1[%45, %c0_43, %c0_44] : memref<16x1x128xf32, #tpu.memory_space<vmem>>, vector<1x1x128xf32>
    %47 = vector.shape_cast %46 : vector<1x1x128xf32> to vector<1x128xf32>
    %c3_45 = arith.constant 3 : index
    %c0_46 = arith.constant 0 : index
    %c0_47 = arith.constant 0 : index
    %48 = vector.load %arg6[%c3_45, %c0_46, %c0_47] : memref<8x8x128xf32, #tpu.memory_space<vmem>>, vector<1x1x128xf32>
    %49 = vector.shape_cast %48 : vector<1x1x128xf32> to vector<1x128xf32>
    %50 = vector.shape_cast %47 : vector<1x128xf32> to vector<1x1x128xf32>
    tpu.vector_store %arg6[%c3_45, %c0_46, %c0_47], %50 {strides = array<i32>} : memref<8x8x128xf32, #tpu.memory_space<vmem>>, vector<1x1x128xf32>,
    %c1_48 = arith.constant 1 : index
    %c3_49 = arith.constant 3 : index
    %51 = memref.load %arg0[%c1_48, %c3_49] : memref<2x8xi32, #tpu.memory_space<smem>>
    %52 = arith.index_cast %51 : i32 to index
    %c0_50 = arith.constant 0 : index
    %c0_51 = arith.constant 0 : index
    %53 = vector.load %arg1[%52, %c0_50, %c0_51] : memref<16x1x128xf32, #tpu.memory_space<vmem>>, vector<1x1x128xf32>
    %54 = vector.shape_cast %53 : vector<1x1x128xf32> to vector<1x128xf32>
    %c3_52 = arith.constant 3 : index
    %c1_53 = arith.constant 1 : index
    %c0_54 = arith.constant 0 : index
    %55 = vector.load %arg6[%c3_52, %c1_53, %c0_54] : memref<8x8x128xf32, #tpu.memory_space<vmem>>, vector<1x1x128xf32>
    %56 = vector.shape_cast %55 : vector<1x1x128xf32> to vector<1x128xf32>
    %57 = vector.shape_cast %54 : vector<1x128xf32> to vector<1x1x128xf32>
    tpu.vector_store %arg6[%c3_52, %c1_53, %c0_54], %57 {strides = array<i32>} : memref<8x8x128xf32, #tpu.memory_space<vmem>>, vector<1x1x128xf32>,
    %c0_55 = arith.constant 0 : index
    %c4 = arith.constant 4 : index
    %58 = memref.load %arg0[%c0_55, %c4] : memref<2x8xi32, #tpu.memory_space<smem>>
    %59 = arith.index_cast %58 : i32 to index
    %c0_56 = arith.constant 0 : index
    %c0_57 = arith.constant 0 : index
    %60 = vector.load %arg1[%59, %c0_56, %c0_57] : memref<16x1x128xf32, #tpu.memory_space<vmem>>, vector<1x1x128xf32>
    %61 = vector.shape_cast %60 : vector<1x1x128xf32> to vector<1x128xf32>
    %c4_58 = arith.constant 4 : index
    %c0_59 = arith.constant 0 : index
    %c0_60 = arith.constant 0 : index
    %62 = vector.load %arg6[%c4_58, %c0_59, %c0_60] : memref<8x8x128xf32, #tpu.memory_space<vmem>>, vector<1x1x128xf32>
    %63 = vector.shape_cast %62 : vector<1x1x128xf32> to vector<1x128xf32>
    %64 = vector.shape_cast %61 : vector<1x128xf32> to vector<1x1x128xf32>
    tpu.vector_store %arg6[%c4_58, %c0_59, %c0_60], %64 {strides = array<i32>} : memref<8x8x128xf32, #tpu.memory_space<vmem>>, vector<1x1x128xf32>,
    %c1_61 = arith.constant 1 : index
    %c4_62 = arith.constant 4 : index
    %65 = memref.load %arg0[%c1_61, %c4_62] : memref<2x8xi32, #tpu.memory_space<smem>>
    %66 = arith.index_cast %65 : i32 to index
    %c0_63 = arith.constant 0 : index
    %c0_64 = arith.constant 0 : index
    %67 = vector.load %arg1[%66, %c0_63, %c0_64] : memref<16x1x128xf32, #tpu.memory_space<vmem>>, vector<1x1x128xf32>
    %68 = vector.shape_cast %67 : vector<1x1x128xf32> to vector<1x128xf32>
    %c4_65 = arith.constant 4 : index
    %c1_66 = arith.constant 1 : index
    %c0_67 = arith.constant 0 : index
    %69 = vector.load %arg6[%c4_65, %c1_66, %c0_67] : memref<8x8x128xf32, #tpu.memory_space<vmem>>, vector<1x1x128xf32>
    %70 = vector.shape_cast %69 : vector<1x1x128xf32> to vector<1x128xf32>
    %71 = vector.shape_cast %68 : vector<1x128xf32> to vector<1x1x128xf32>
    tpu.vector_store %arg6[%c4_65, %c1_66, %c0_67], %71 {strides = array<i32>} : memref<8x8x128xf32, #tpu.memory_space<vmem>>, vector<1x1x128xf32>,
    %c0_68 = arith.constant 0 : index
    %c5 = arith.constant 5 : index
    %72 = memref.load %arg0[%c0_68, %c5] : memref<2x8xi32, #tpu.memory_space<smem>>
    %73 = arith.index_cast %72 : i32 to index
    %c0_69 = arith.constant 0 : index
    %c0_70 = arith.constant 0 : index
    %74 = vector.load %arg1[%73, %c0_69, %c0_70] : memref<16x1x128xf32, #tpu.memory_space<vmem>>, vector<1x1x128xf32>
    %75 = vector.shape_cast %74 : vector<1x1x128xf32> to vector<1x128xf32>
    %c5_71 = arith.constant 5 : index
    %c0_72 = arith.constant 0 : index
    %c0_73 = arith.constant 0 : index
    %76 = vector.load %arg6[%c5_71, %c0_72, %c0_73] : memref<8x8x128xf32, #tpu.memory_space<vmem>>, vector<1x1x128xf32>
    %77 = vector.shape_cast %76 : vector<1x1x128xf32> to vector<1x128xf32>
    %78 = vector.shape_cast %75 : vector<1x128xf32> to vector<1x1x128xf32>
    tpu.vector_store %arg6[%c5_71, %c0_72, %c0_73], %78 {strides = array<i32>} : memref<8x8x128xf32, #tpu.memory_space<vmem>>, vector<1x1x128xf32>,
    %c1_74 = arith.constant 1 : index
    %c5_75 = arith.constant 5 : index
    %79 = memref.load %arg0[%c1_74, %c5_75] : memref<2x8xi32, #tpu.memory_space<smem>>
    %80 = arith.index_cast %79 : i32 to index
    %c0_76 = arith.constant 0 : index
    %c0_77 = arith.constant 0 : index
    %81 = vector.load %arg1[%80, %c0_76, %c0_77] : memref<16x1x128xf32, #tpu.memory_space<vmem>>, vector<1x1x128xf32>
    %82 = vector.shape_cast %81 : vector<1x1x128xf32> to vector<1x128xf32>
    %c5_78 = arith.constant 5 : index
    %c1_79 = arith.constant 1 : index
    %c0_80 = arith.constant 0 : index
    %83 = vector.load %arg6[%c5_78, %c1_79, %c0_80] : memref<8x8x128xf32, #tpu.memory_space<vmem>>, vector<1x1x128xf32>
    %84 = vector.shape_cast %83 : vector<1x1x128xf32> to vector<1x128xf32>
    %85 = vector.shape_cast %82 : vector<1x128xf32> to vector<1x1x128xf32>
    tpu.vector_store %arg6[%c5_78, %c1_79, %c0_80], %85 {strides = array<i32>} : memref<8x8x128xf32, #tpu.memory_space<vmem>>, vector<1x1x128xf32>,
    %c0_81 = arith.constant 0 : index
    %c6 = arith.constant 6 : index
    %86 = memref.load %arg0[%c0_81, %c6] : memref<2x8xi32, #tpu.memory_space<smem>>
    %87 = arith.index_cast %86 : i32 to index
    %c0_82 = arith.constant 0 : index
    %c0_83 = arith.constant 0 : index
    %88 = vector.load %arg1[%87, %c0_82, %c0_83] : memref<16x1x128xf32, #tpu.memory_space<vmem>>, vector<1x1x128xf32>
    %89 = vector.shape_cast %88 : vector<1x1x128xf32> to vector<1x128xf32>
    %c6_84 = arith.constant 6 : index
    %c0_85 = arith.constant 0 : index
    %c0_86 = arith.constant 0 : index
    %90 = vector.load %arg6[%c6_84, %c0_85, %c0_86] : memref<8x8x128xf32, #tpu.memory_space<vmem>>, vector<1x1x128xf32>
    %91 = vector.shape_cast %90 : vector<1x1x128xf32> to vector<1x128xf32>
    %92 = vector.shape_cast %89 : vector<1x128xf32> to vector<1x1x128xf32>
    tpu.vector_store %arg6[%c6_84, %c0_85, %c0_86], %92 {strides = array<i32>} : memref<8x8x128xf32, #tpu.memory_space<vmem>>, vector<1x1x128xf32>,
    %c1_87 = arith.constant 1 : index
    %c6_88 = arith.constant 6 : index
    %93 = memref.load %arg0[%c1_87, %c6_88] : memref<2x8xi32, #tpu.memory_space<smem>>
    %94 = arith.index_cast %93 : i32 to index
    %c0_89 = arith.constant 0 : index
    %c0_90 = arith.constant 0 : index
    %95 = vector.load %arg1[%94, %c0_89, %c0_90] : memref<16x1x128xf32, #tpu.memory_space<vmem>>, vector<1x1x128xf32>
    %96 = vector.shape_cast %95 : vector<1x1x128xf32> to vector<1x128xf32>
    %c6_91 = arith.constant 6 : index
    %c1_92 = arith.constant 1 : index
    %c0_93 = arith.constant 0 : index
    %97 = vector.load %arg6[%c6_91, %c1_92, %c0_93] : memref<8x8x128xf32, #tpu.memory_space<vmem>>, vector<1x1x128xf32>
    %98 = vector.shape_cast %97 : vector<1x1x128xf32> to vector<1x128xf32>
    %99 = vector.shape_cast %96 : vector<1x128xf32> to vector<1x1x128xf32>
    tpu.vector_store %arg6[%c6_91, %c1_92, %c0_93], %99 {strides = array<i32>} : memref<8x8x128xf32, #tpu.memory_space<vmem>>, vector<1x1x128xf32>,
    %c0_94 = arith.constant 0 : index
    %c7 = arith.constant 7 : index
    %100 = memref.load %arg0[%c0_94, %c7] : memref<2x8xi32, #tpu.memory_space<smem>>
    %101 = arith.index_cast %100 : i32 to index
    %c0_95 = arith.constant 0 : index
    %c0_96 = arith.constant 0 : index
    %102 = vector.load %arg1[%101, %c0_95, %c0_96] : memref<16x1x128xf32, #tpu.memory_space<vmem>>, vector<1x1x128xf32>
    %103 = vector.shape_cast %102 : vector<1x1x128xf32> to vector<1x128xf32>
    %c7_97 = arith.constant 7 : index
    %c0_98 = arith.constant 0 : index
    %c0_99 = arith.constant 0 : index
    %104 = vector.load %arg6[%c7_97, %c0_98, %c0_99] : memref<8x8x128xf32, #tpu.memory_space<vmem>>, vector<1x1x128xf32>
    %105 = vector.shape_cast %104 : vector<1x1x128xf32> to vector<1x128xf32>
    %106 = vector.shape_cast %103 : vector<1x128xf32> to vector<1x1x128xf32>
    tpu.vector_store %arg6[%c7_97, %c0_98, %c0_99], %106 {strides = array<i32>} : memref<8x8x128xf32, #tpu.memory_space<vmem>>, vector<1x1x128xf32>,
    %c1_100 = arith.constant 1 : index
    %c7_101 = arith.constant 7 : index
    %107 = memref.load %arg0[%c1_100, %c7_101] : memref<2x8xi32, #tpu.memory_space<smem>>
    %108 = arith.index_cast %107 : i32 to index
    %c0_102 = arith.constant 0 : index
    %c0_103 = arith.constant 0 : index
    %109 = vector.load %arg1[%108, %c0_102, %c0_103] : memref<16x1x128xf32, #tpu.memory_space<vmem>>, vector<1x1x128xf32>
    %110 = vector.shape_cast %109 : vector<1x1x128xf32> to vector<1x128xf32>
    %c7_104 = arith.constant 7 : index
    %c1_105 = arith.constant 1 : index
    %c0_106 = arith.constant 0 : index
    %111 = vector.load %arg6[%c7_104, %c1_105, %c0_106] : memref<8x8x128xf32, #tpu.memory_space<vmem>>, vector<1x1x128xf32>
    %112 = vector.shape_cast %111 : vector<1x1x128xf32> to vector<1x128xf32>
    %113 = vector.shape_cast %110 : vector<1x128xf32> to vector<1x1x128xf32>
    tpu.vector_store %arg6[%c7_104, %c1_105, %c0_106], %113 {strides = array<i32>} : memref<8x8x128xf32, #tpu.memory_space<vmem>>, vector<1x1x128xf32>,
    %c0_107 = arith.constant 0 : index
    %c0_108 = arith.constant 0 : index
    %114 = vector.load %arg2[%c0_107, %c0_108] : memref<128x128xf32, #tpu.memory_space<vmem>>, vector<128x128xf32>
    %cst_109 = arith.constant 0.000000e+00 : f32
    %115 = vector.broadcast %cst_109 : f32 to vector<8x128xf32>
    %c0_i32 = arith.constant 0 : i32
    %116 = arith.index_cast %c0_i32 : i32 to index
    %c0_110 = arith.constant 0 : index
    %c0_111 = arith.constant 0 : index
    %117 = vector.load %arg6[%116, %c0_110, %c0_111] : memref<8x8x128xf32, #tpu.memory_space<vmem>>, vector<1x8x128xf32>
    %118 = vector.shape_cast %117 : vector<1x8x128xf32> to vector<8x128xf32>
    %cst_112 = arith.constant dense<0.000000e+00> : vector<8x128xf32>
    %119 = tpu.matmul %115, %114, %cst_112 {dimension_numbers = #tpu.dot_dimension_numbers<[1], [0], [0], [1], [0, 0, 1, 1], [], []>} : vector<8x128xf32>, vector<128x128xf32>, vector<8x128xf32> -> vector<8x128xf32>
    %120 = arith.addf %118, %119 : vector<8x128xf32>
    %121 = math.tanh %120 : vector<8x128xf32>
    %c1_i32 = arith.constant 1 : i32
    %122 = arith.index_cast %c1_i32 : i32 to index
    %c0_113 = arith.constant 0 : index
    %c0_114 = arith.constant 0 : index
    %123 = vector.load %arg6[%122, %c0_113, %c0_114] : memref<8x8x128xf32, #tpu.memory_space<vmem>>, vector<1x8x128xf32>
    %124 = vector.shape_cast %123 : vector<1x8x128xf32> to vector<8x128xf32>
    %cst_115 = arith.constant dense<0.000000e+00> : vector<8x128xf32>
    %125 = tpu.matmul %121, %114, %cst_115 {dimension_numbers = #tpu.dot_dimension_numbers<[1], [0], [0], [1], [0, 0, 1, 1], [], []>} : vector<8x128xf32>, vector<128x128xf32>, vector<8x128xf32> -> vector<8x128xf32>
    %126 = arith.addf %124, %125 : vector<8x128xf32>
    %127 = math.tanh %126 : vector<8x128xf32>
    %c2_i32 = arith.constant 2 : i32
    %128 = arith.index_cast %c2_i32 : i32 to index
    %c0_116 = arith.constant 0 : index
    %c0_117 = arith.constant 0 : index
    %129 = vector.load %arg6[%128, %c0_116, %c0_117] : memref<8x8x128xf32, #tpu.memory_space<vmem>>, vector<1x8x128xf32>
    %130 = vector.shape_cast %129 : vector<1x8x128xf32> to vector<8x128xf32>
    %cst_118 = arith.constant dense<0.000000e+00> : vector<8x128xf32>
    %131 = tpu.matmul %127, %114, %cst_118 {dimension_numbers = #tpu.dot_dimension_numbers<[1], [0], [0], [1], [0, 0, 1, 1], [], []>} : vector<8x128xf32>, vector<128x128xf32>, vector<8x128xf32> -> vector<8x128xf32>
    %132 = arith.addf %130, %131 : vector<8x128xf32>
    %133 = math.tanh %132 : vector<8x128xf32>
    %c3_i32 = arith.constant 3 : i32
    %134 = arith.index_cast %c3_i32 : i32 to index
    %c0_119 = arith.constant 0 : index
    %c0_120 = arith.constant 0 : index
    %135 = vector.load %arg6[%134, %c0_119, %c0_120] : memref<8x8x128xf32, #tpu.memory_space<vmem>>, vector<1x8x128xf32>
    %136 = vector.shape_cast %135 : vector<1x8x128xf32> to vector<8x128xf32>
    %cst_121 = arith.constant dense<0.000000e+00> : vector<8x128xf32>
    %137 = tpu.matmul %133, %114, %cst_121 {dimension_numbers = #tpu.dot_dimension_numbers<[1], [0], [0], [1], [0, 0, 1, 1], [], []>} : vector<8x128xf32>, vector<128x128xf32>, vector<8x128xf32> -> vector<8x128xf32>
    %138 = arith.addf %136, %137 : vector<8x128xf32>
    %139 = math.tanh %138 : vector<8x128xf32>
    %c4_i32 = arith.constant 4 : i32
    %140 = arith.index_cast %c4_i32 : i32 to index
    %c0_122 = arith.constant 0 : index
    %c0_123 = arith.constant 0 : index
    %141 = vector.load %arg6[%140, %c0_122, %c0_123] : memref<8x8x128xf32, #tpu.memory_space<vmem>>, vector<1x8x128xf32>
    %142 = vector.shape_cast %141 : vector<1x8x128xf32> to vector<8x128xf32>
    %cst_124 = arith.constant dense<0.000000e+00> : vector<8x128xf32>
    %143 = tpu.matmul %139, %114, %cst_124 {dimension_numbers = #tpu.dot_dimension_numbers<[1], [0], [0], [1], [0, 0, 1, 1], [], []>} : vector<8x128xf32>, vector<128x128xf32>, vector<8x128xf32> -> vector<8x128xf32>
    %144 = arith.addf %142, %143 : vector<8x128xf32>
    %145 = math.tanh %144 : vector<8x128xf32>
    %c5_i32 = arith.constant 5 : i32
    %146 = arith.index_cast %c5_i32 : i32 to index
    %c0_125 = arith.constant 0 : index
    %c0_126 = arith.constant 0 : index
    %147 = vector.load %arg6[%146, %c0_125, %c0_126] : memref<8x8x128xf32, #tpu.memory_space<vmem>>, vector<1x8x128xf32>
    %148 = vector.shape_cast %147 : vector<1x8x128xf32> to vector<8x128xf32>
    %cst_127 = arith.constant dense<0.000000e+00> : vector<8x128xf32>
    %149 = tpu.matmul %145, %114, %cst_127 {dimension_numbers = #tpu.dot_dimension_numbers<[1], [0], [0], [1], [0, 0, 1, 1], [], []>} : vector<8x128xf32>, vector<128x128xf32>, vector<8x128xf32> -> vector<8x128xf32>
    %150 = arith.addf %148, %149 : vector<8x128xf32>
    %151 = math.tanh %150 : vector<8x128xf32>
    %c6_i32 = arith.constant 6 : i32
    %152 = arith.index_cast %c6_i32 : i32 to index
    %c0_128 = arith.constant 0 : index
    %c0_129 = arith.constant 0 : index
    %153 = vector.load %arg6[%152, %c0_128, %c0_129] : memref<8x8x128xf32, #tpu.memory_space<vmem>>, vector<1x8x128xf32>
    %154 = vector.shape_cast %153 : vector<1x8x128xf32> to vector<8x128xf32>
    %cst_130 = arith.constant dense<0.000000e+00> : vector<8x128xf32>
    %155 = tpu.matmul %151, %114, %cst_130 {dimension_numbers = #tpu.dot_dimension_numbers<[1], [0], [0], [1], [0, 0, 1, 1], [], []>} : vector<8x128xf32>, vector<128x128xf32>, vector<8x128xf32> -> vector<8x128xf32>
    %156 = arith.addf %154, %155 : vector<8x128xf32>
    %157 = math.tanh %156 : vector<8x128xf32>
    %c7_i32 = arith.constant 7 : i32
    %158 = arith.index_cast %c7_i32 : i32 to index
    %c0_131 = arith.constant 0 : index
    %c0_132 = arith.constant 0 : index
    %159 = vector.load %arg6[%158, %c0_131, %c0_132] : memref<8x8x128xf32, #tpu.memory_space<vmem>>, vector<1x8x128xf32>
    %160 = vector.shape_cast %159 : vector<1x8x128xf32> to vector<8x128xf32>
    %cst_133 = arith.constant dense<0.000000e+00> : vector<8x128xf32>
    %161 = tpu.matmul %157, %114, %cst_133 {dimension_numbers = #tpu.dot_dimension_numbers<[1], [0], [0], [1], [0, 0, 1, 1], [], []>} : vector<8x128xf32>, vector<128x128xf32>, vector<8x128xf32> -> vector<8x128xf32>
    %162 = arith.addf %160, %161 : vector<8x128xf32>
    %163 = math.tanh %162 : vector<8x128xf32>
    %c8_i32 = arith.constant 8 : i32
    %c0_134 = arith.constant 0 : index
    %c0_135 = arith.constant 0 : index
    %164 = vector.load %arg3[%c0_134, %c0_135] : memref<128x128xf32, #tpu.memory_space<vmem>>, vector<128x128xf32>
    %cst_136 = arith.constant dense<0.000000e+00> : vector<8x128xf32>
    %165 = tpu.matmul %163, %164, %cst_136 {dimension_numbers = #tpu.dot_dimension_numbers<[1], [0], [0], [1], [0, 0, 1, 1], [], []>} : vector<8x128xf32>, vector<128x128xf32>, vector<8x128xf32> -> vector<8x128xf32>
    %c0_137 = arith.constant 0 : index
    %c0_138 = arith.constant 0 : index
    %166 = vector.load %arg4[%c0_137, %c0_138] : memref<1x128xf32, #tpu.memory_space<vmem>>, vector<1x128xf32>
    %167 = vector.broadcast %166 : vector<1x128xf32> to vector<8x128xf32>
    %168 = arith.addf %165, %167 : vector<8x128xf32>
    %c0_139 = arith.constant 0 : index
    %c0_140 = arith.constant 0 : index
    %169 = vector.load %arg5[%c0_139, %c0_140] : memref<8x128xf32, #tpu.memory_space<vmem>>, vector<8x128xf32>
    tpu.vector_store %arg5[%c0_139, %c0_140], %168 {strides = array<i32>} : memref<8x128xf32, #tpu.memory_space<vmem>>, vector<8x128xf32>,
    return
  }
}

</mosaic_0001>

<bundles_post_ra>
// kernel: tpu_custom_call.1
= control target key start
LH: loop header
LB: loop body
LE: loop exit
PB: predicated region body
PF: predicated region fallthrough
CT: control target
= control target key end

     0   :  { %10 = vsyncpa [#allocation6], 0  ;;  %s2003_s0 = inlined_call_operand.hbm [shape: s32[2,8], index: 0, kind: input, shape index: {}]   ;;  %s2004_s1 = inlined_call_operand.hbm [shape: f32[16,1,128], index: 1, kind: input, shape index: {}]   ;;  %s2005_s2 = inlined_call_operand.hbm [shape: f32[128,128], index: 2, kind: input, shape index: {}]   ;;  %s2006_s3 = inlined_call_operand.hbm [shape: f32[128,128], index: 3, kind: input, shape index: {}]   ;;  %s2007_s4 = inlined_call_operand.vmem [shape: f32[1,128], index: 4, kind: input, shape index: {}]   ;;  %s2008_s5 = inlined_call_operand.hbm [shape: f32[8,128], index: 5, kind: output, shape index: {}]  }
   0x1   :  { %11 = vsyncpa [#allocation4], 0 }
   0x2   :  { %12 = vsyncpa [#allocation9], 0 }
   0x3   :  { %13 = vsyncpa [#allocation5], 0  ;;  %s1713_s18 = smov [#allocation8]   ;;  %s1607_s22 = scalar_lea.hbm %s2005_s2, 2048 }
   0x4   :  { %s39_s19 = sshll.u32 %s1713_s18, 4  ;;  %p1608_p0 = scmp.ne.s32.totalorder %s2005_s2, %s1607_s22  ;;  %s40_s19 = int_to_ptr.vmem [resolvable:$true] %s39_s19 }
   0x5   :  { %p1611_p1 = scmp.lt.u32.totalorder %s1607_s22, %s2005_s2 }
   0x7   :  { %p1613_p2 = pnand %p1611_p1, %p1608_p0 }
   0x9   :  { %1616 = shalt.err (!%p1613_p2)
}
   0xa   :  { %s1617_s27 = scalar_lea.vmem %s40_s19, 2048  ;;  %p1622_p4 = scmp.lt.s32.totalorder %s40_s19, %s40_s19 }
   0xb   :  { %p1618_p3 = scmp.ne.s32.totalorder %s40_s19, %s1617_s27  ;;  %p1623_p5 = scmp.lt.s32.totalorder %s1617_s27, %s1617_s27 }
   0xd   :  { %p1624_p6 = por %p1623_p5, %p1622_p4 }
   0xf   :  { %p1625_p7 = pnand %p1624_p6, %p1618_p3 }
  0x11   :  { %1628 = shalt.err (!%p1625_p7)
}
  0x12   :  { %s1714_s28 = smov 128   ;;  %s1715_s29 = smov 8  }
  0x13   :  { %45 = dma.hbm_to_vmem [thread:$0]  %s2005_s2, 2048, %s40_s19, [#allocation9], %s1714_s28, %s1714_s28, %s1715_s29  }
  0x14   :  { %s1629_s9 = scalar_lea.hbm %s2003_s0, 32 }
  0x15   :  { %p1630_p8 = scmp.ne.s32.totalorder %s2003_s0, %s1629_s9  ;;  %p1633_p9 = scmp.lt.u32.totalorder %s1629_s9, %s2003_s0 }
  0x17   :  { %p1635_p10 = pnand %p1633_p9, %p1630_p8 }
  0x19   :  { %1638 = shalt.err (!%p1635_p10)
}
  0x1a   :  { %s1716_s14 = smov [#allocation3]   ;;  %s1717_s2 = smov [#allocation7]  }
  0x1b   :  { %21 = dma.hbm_to_smem %s2003_s0, 32, %s1716_s14, [#allocation6]  }
  0x1c   :  { %s27_s17 = sshll.u32 %s1717_s2, 4  ;;  %s1639_s20 = scalar_lea.hbm %s2004_s1, 256  ;;  %s28_s17 = int_to_ptr.vmem [resolvable:$true] %s27_s17 }
  0x1d   :  { %p1640_p11 = scmp.ne.s32.totalorder %s2004_s1, %s1639_s20  ;;  %p1643_p12 = scmp.lt.u32.totalorder %s1639_s20, %s2004_s1 }
  0x1f   :  { %p1645_p13 = pnand %p1643_p12, %p1640_p11 }
  0x21   :  { %1648 = shalt.err (!%p1645_p13)
}
  0x22   :  { %s1649_s25 = scalar_lea.vmem %s28_s17, 256  ;;  %p1654_p1 = scmp.lt.s32.totalorder %s28_s17, %s28_s17 }
  0x23   :  { %p1650_p0 = scmp.ne.s32.totalorder %s28_s17, %s1649_s25  ;;  %p1655_p2 = scmp.lt.s32.totalorder %s1649_s25, %s1649_s25 }
  0x25   :  { %p1656_p3 = por %p1655_p2, %p1654_p1 }
  0x27   :  { %p1657_p4 = pnand %p1656_p3, %p1650_p0 }
  0x29   :  { %1660 = shalt.err (!%p1657_p4)
}
  0x2a   :  { %s1718_s0 = smov 16   ;;  %s1719_s26 = smov 1  }
  0x2b   :  { %33 = dma.hbm_to_vmem [thread:$0]  %s2004_s1, 256, %s28_s17, [#allocation4], %s1718_s0, %s1718_s0, %s1719_s26  }
  0x2c   :  { %s1720_s6 = smov [#allocation10]   ;;  %s1661_s10 = scalar_lea.hbm %s2006_s3, 2048 }
  0x2d   :  { %s51_s7 = sshll.u32 %s1720_s6, 4  ;;  %p1662_p5 = scmp.ne.s32.totalorder %s2006_s3, %s1661_s10  ;;  %s52_s7 = int_to_ptr.vmem [resolvable:$true] %s51_s7 }
  0x2e   :  { %p1665_p6 = scmp.lt.u32.totalorder %s1661_s10, %s2006_s3 }
  0x30   :  { %p1667_p7 = pnand %p1665_p6, %p1662_p5 }
  0x32   :  { %1670 = shalt.err (!%p1667_p7)
}
  0x33   :  { %s1671_s15 = scalar_lea.vmem %s52_s7, 2048  ;;  %p1676_p9 = scmp.lt.s32.totalorder %s52_s7, %s52_s7 }
  0x34   :  { %p1672_p8 = scmp.ne.s32.totalorder %s52_s7, %s1671_s15  ;;  %p1677_p10 = scmp.lt.s32.totalorder %s1671_s15, %s1671_s15 }
  0x36   :  { %p1678_p11 = por %p1677_p10, %p1676_p9 }
  0x38   :  { %p1679_p12 = pnand %p1678_p11, %p1672_p8 }
  0x3a   :  { %1682 = shalt.err (!%p1679_p12)
}
  0x3b   :  { %57 = dma.hbm_to_vmem [thread:$0]  %s2006_s3, 2048, %s52_s7, [#allocation9], %s1714_s28, %s1714_s28, %s1715_s29  }
  0x3c   :  { %1705 = dma.done.wait [#allocation6], 32  }
  0x3d   :  { %1706 = vsyncadd [#allocation6], 4294967264 }
  0x3e   :  { %1707 = dma.done.wait [#allocation4], 256  }
  0x3f   :  { %1708 = vsyncadd [#allocation4], 4294967040 }
  0x40   :  { %1709 = dma.done.wait [#allocation9], 4096  }
  0x41   :  { %1710 = vsyncadd [#allocation9], 4294963200 }
  0x42   :  { %72 = sfence }
  0x43   :  { %v152_v0 = vld [vmem:[#allocation8] sm:$0xff]  ;;  %v153_v1 = vld [vmem:[#allocation8 + $0x8] sm:$0xff]  ;;  %v154_v2 = vld [vmem:[#allocation8 + $0x10] sm:$0xff]  ;;  %v1721_v3 = vmov 0.0|0.0   ;;  %vm1722_vm0 = vmmov 0   ;;  %v1723_v6 = vmov 0.0  }
  0x44   :  { %1363 = vmatprep.subr.bf16.mxu0 %v1721_v3  ;;  %v1810_v4 = vpack.c.bf16 %v153_v1, %v152_v0  ;;  %v155_v5 = vld [vmem:[#allocation8 + $0x18] sm:$0xff]  ;;  %1080 = vmatprep.mubr.msk.f32.mxu0 %vm1722_vm0, %v1723_v6  ;;  %73 = vst [vmem:[#allocation2] sm:$0xff] %v1723_v6  ;;  %74 = vst [vmem:[#allocation2 + $0x8] sm:$0xff] %v1723_v6  ;;  %s81_s3 = sld [smem:[#allocation3]]  ;;  %v156_v8 = vld [vmem:[#allocation8 + $0x20] sm:$0xff]  ;;  %s880_s17 = sld [smem:[#allocation3 + $0x1]] }
  0x45   :  { %75 = vst [vmem:[#allocation2 + $0x10] sm:$0xff] %v1723_v6  ;;  %76 = vst [vmem:[#allocation2 + $0x18] sm:$0xff] %v1723_v6  ;;  %1387 = vmatprep.subr.bf16.mxu1 %v1721_v3  ;;  %s879_s28 = sld [smem:[#allocation3 + $0x80]]  ;;  %1115 = vmatprep.mubr.msk.f32.mxu1 %vm1722_vm0, %v1723_v6  ;;  %v1826_v7 = vpack.c.bf16 %v155_v5, %v154_v2  ;;  %v157_v9 = vld [vmem:[#allocation8 + $0x28] sm:$0xff]  ;;  %v158_v11 = vld [vmem:[#allocation8 + $0x30] sm:$0xff]  ;;  %s881_s18 = sld [smem:[#allocation3 + $0x81]] }
  0x46   :  { %77 = vst [vmem:[#allocation2 + $0x20] sm:$0xff] %v1723_v6  ;;  %78 = vst [vmem:[#allocation2 + $0x28] sm:$0xff] %v1723_v6  ;;  %1365 = vmatpush3.bf16.msra.mxu0 %v1810_v4  ;;  %1389 = vmatpush3.bf16.msra.mxu1 %v1810_v4  ;;  %v1832_v10 = vpack.c.bf16 %v157_v9, %v156_v8  ;;  %v159_v12 = vld [vmem:[#allocation8 + $0x38] sm:$0xff]  ;;  %v160_v16 = vld [vmem:[#allocation8 + $0x40] sm:$0xff]  ;;  %s882_s21 = sld [smem:[#allocation3 + $0x2]]  ;;  %s884_s25 = sld [smem:[#allocation3 + $0x3]] }
  0x47   :  { %79 = vst [vmem:[#allocation2 + $0x30] sm:$0xff] %v1723_v6  ;;  %80 = vst [vmem:[#allocation2 + $0x38] sm:$0xff] %v1723_v6  ;;  %1366 = vmatprep.subr.bf16.mxu0 %v1721_v3  ;;  %1390 = vmatprep.subr.bf16.mxu1 %v1721_v3  ;;  %v1838_v15 = vpack.c.bf16 %v159_v12, %v158_v11  ;;  %v161_v17 = vld [vmem:[#allocation8 + $0x48] sm:$0xff]  ;;  %v162_v19 = vld [vmem:[#allocation8 + $0x50] sm:$0xff]  ;;  %s883_s22 = sld [smem:[#allocation3 + $0x82]]  ;;  %s885_s0 = sld [smem:[#allocation3 + $0x83]] }
  0x48   :  { %v1844_v18 = vpack.c.bf16 %v161_v17, %v160_v16  ;;  %v163_v20 = vld [vmem:[#allocation8 + $0x58] sm:$0xff]  ;;  %v164_v22 = vld [vmem:[#allocation8 + $0x60] sm:$0xff]  ;;  %v165_v23 = vld [vmem:[#allocation8 + $0x68] sm:$0xff]  ;;  %s886_s30 = sld [smem:[#allocation3 + $0x4]]  ;;  %s888_s9 = sld [smem:[#allocation3 + $0x5]] }
  0x49   :  { %v1850_v21 = vpack.c.bf16 %v163_v20, %v162_v19  ;;  %v1856_v24 = vpack.c.bf16 %v165_v23, %v164_v22  ;;  %v166_v25 = vld [vmem:[#allocation8 + $0x70] sm:$0xff]  ;;  %v167_v26 = vld [vmem:[#allocation8 + $0x78] sm:$0xff]  ;;  %s887_s6 = sld [smem:[#allocation3 + $0x84]]  ;;  %s889_s10 = sld [smem:[#allocation3 + $0x85]]  ;;  %v752_v8 = vld [vmem:[#allocation10] sm:$0xff] }
  0x4a   :  { %1368 = vmatpush3.bf16.msra.mxu0 %v1826_v7  ;;  %1392 = vmatpush3.bf16.msra.mxu1 %v1826_v7  ;;  %s82_s29 = scalar_lea.vmem [#allocation7], %s81_s3  ;;  %v1862_v27 = vpack.c.bf16 %v167_v26, %v166_v25  ;;  %s90_s19 = scalar_lea.vmem [#allocation7], %s880_s17  ;;  %v753_v9 = vld [vmem:[#allocation10 + $0x8] sm:$0xff]  ;;  %v755_v12 = vld [vmem:[#allocation10 + $0x18] sm:$0xff] }
  0x4b   :  { %1369 = vmatprep.subr.bf16.mxu0 %v1721_v3  ;;  %1393 = vmatprep.subr.bf16.mxu1 %v1721_v3  ;;  %v83_v13 = vld [vmem:[%s82_s29] sm:$0x1]  ;;  %s86_s2 = scalar_lea.vmem [#allocation7], %s879_s28  ;;  %s95_s20 = scalar_lea.vmem [#allocation7], %s881_s18  ;;  %v1556_v11 = vpack.c.bf16 %v753_v9, %v752_v8  ;;  %v761_v22 = vld [vmem:[#allocation10 + $0x48] sm:$0xff] }
  0x4c   :  { %84 = vst [vmem:[#allocation2] sm:$0x1] %v83_v13  ;;  %v87_v14 = vld [vmem:[%s86_s2] sm:$0x1]  ;;  %s99_s23 = scalar_lea.vmem [#allocation7], %s882_s21  ;;  %s108_s26 = scalar_lea.vmem [#allocation7], %s884_s25 }
  0x4d   :  { %88 = vst [vmem:[#allocation2 + $0x1] sm:$0x1] %v87_v14  ;;  %v91_v28 = vld [vmem:[%s90_s19] sm:$0x1]  ;;  %s104_s24 = scalar_lea.vmem [#allocation7], %s883_s22  ;;  %s113_s27 = scalar_lea.vmem [#allocation7], %s885_s0 }
  0x4e   :  { %1371 = vmatpush3.bf16.msra.mxu0 %v1832_v10  ;;  %1395 = vmatpush3.bf16.msra.mxu1 %v1832_v10  ;;  %v96_v29 = vld [vmem:[%s95_s20] sm:$0x1]  ;;  %93 = vst [vmem:[#allocation2 + $0x8] sm:$0x1] %v91_v28  ;;  %s117_s7 = scalar_lea.vmem [#allocation7], %s886_s30  ;;  %s126_s11 = scalar_lea.vmem [#allocation7], %s888_s9 }
  0x4f   :  { %1372 = vmatprep.subr.bf16.mxu0 %v1721_v3  ;;  %1396 = vmatprep.subr.bf16.mxu1 %v1721_v3  ;;  %97 = vst [vmem:[#allocation2 + $0x9] sm:$0x1] %v96_v29  ;;  %v100_v35 = vld [vmem:[%s99_s23] sm:$0x1]  ;;  %s122_s8 = scalar_lea.vmem [#allocation7], %s887_s6  ;;  %s131_s12 = scalar_lea.vmem [#allocation7], %s889_s10 }
  0x50   :  { %v105_v36 = vld [vmem:[%s104_s24] sm:$0x1]  ;;  %102 = vst [vmem:[#allocation2 + $0x10] sm:$0x1] %v100_v35  ;;  %s890_s13 = sld [smem:[#allocation3 + $0x6]]  ;;  %s892_s16 = sld [smem:[#allocation3 + $0x7]] }
  0x51   :  { %106 = vst [vmem:[#allocation2 + $0x11] sm:$0x1] %v105_v36  ;;  %v109_v42 = vld [vmem:[%s108_s26] sm:$0x1]  ;;  %s891_s14 = sld [smem:[#allocation3 + $0x86]]  ;;  %s893_s3 = sld [smem:[#allocation3 + $0x87]] }
  0x52   :  { %1374 = vmatpush3.bf16.msra.mxu0 %v1838_v15  ;;  %1398 = vmatpush3.bf16.msra.mxu1 %v1838_v15  ;;  %v114_v43 = vld [vmem:[%s113_s27] sm:$0x1]  ;;  %111 = vst [vmem:[#allocation2 + $0x18] sm:$0x1] %v109_v42  ;;  %v756_v14 = vld [vmem:[#allocation10 + $0x20] sm:$0xff]  ;;  %v767_v36 = vld [vmem:[#allocation10 + $0x78] sm:$0xff] }
  0x53   :  { %1375 = vmatprep.subr.bf16.mxu0 %v1721_v3  ;;  %1399 = vmatprep.subr.bf16.mxu1 %v1721_v3  ;;  %115 = vst [vmem:[#allocation2 + $0x19] sm:$0x1] %v114_v43  ;;  %v118_v49 = vld [vmem:[%s117_s7] sm:$0x1]  ;;  %s1724_s18 = smov [#allocation11]  }
  0x54   :  { %v168_v30 = vld [vmem:[#allocation2] sm:$0xff]  ;;  %120 = vst [vmem:[#allocation2 + $0x20] sm:$0x1] %v118_v49  ;;  %s852_s19 = sshll.u32 %s1724_s18, 4  ;;  %s853_s19 = int_to_ptr.vmem [resolvable:$true] %s852_s19 }
  0x55   :  { %v123_v50 = vld [vmem:[%s122_s8] sm:$0x1]  ;;  %s1683_s20 = scalar_lea.vmem %s853_s19, 128  ;;  %p1688_p0 = scmp.lt.s32.totalorder %s853_s19, %s853_s19 }
  0x56   :  { %1377 = vmatpush3.bf16.msra.mxu0 %v1844_v18  ;;  %1401 = vmatpush3.bf16.msra.mxu1 %v1844_v18  ;;  %v241_v37 = vld [vmem:[#allocation2 + $0x8] sm:$0xff]  ;;  %124 = vst [vmem:[#allocation2 + $0x21] sm:$0x1] %v123_v50  ;;  %v127_v56 = vld [vmem:[%s126_s11] sm:$0x1]  ;;  %s135_s15 = scalar_lea.vmem [#allocation7], %s890_s13  ;;  %p1684_p13 = scmp.ne.s32.totalorder %s853_s19, %s1683_s20 }
  0x57   :  { %1378 = vmatprep.subr.bf16.mxu0 %v1721_v3  ;;  %1402 = vmatprep.subr.bf16.mxu1 %v1721_v3  ;;  %v132_v57 = vld [vmem:[%s131_s12] sm:$0x1]  ;;  %129 = vst [vmem:[#allocation2 + $0x28] sm:$0x1] %v127_v56  ;;  %s140_s1 = scalar_lea.vmem [#allocation7], %s891_s14  ;;  %s144_s28 = scalar_lea.vmem [#allocation7], %s892_s16 }
  0x58   :  { %v314_v44 = vld [vmem:[#allocation2 + $0x10] sm:$0xff]  ;;  %133 = vst [vmem:[#allocation2 + $0x29] sm:$0x1] %v132_v57  ;;  %v136_v63 = vld [vmem:[%s135_s15] sm:$0x1]  ;;  %s149_s29 = scalar_lea.vmem [#allocation7], %s893_s3  ;;  %p1689_p1 = scmp.lt.s32.totalorder %s1683_s20, %s1683_s20 }
  0x59   :  { %v141_v0 = vld [vmem:[%s140_s1] sm:$0x1]  ;;  %138 = vst [vmem:[#allocation2 + $0x30] sm:$0x1] %v136_v63 }
  0x5a   :  { %1380 = vmatpush3.bf16.msra.mxu0 %v1850_v21  ;;  %1404 = vmatpush3.bf16.msra.mxu1 %v1850_v21  ;;  %v387_v51 = vld [vmem:[#allocation2 + $0x18] sm:$0xff]  ;;  %142 = vst [vmem:[#allocation2 + $0x31] sm:$0x1] %v141_v0  ;;  %v145_v17 = vld [vmem:[%s144_s28] sm:$0x1]  ;;  %p1690_p2 = por %p1689_p1, %p1688_p0 }
  0x5b   :  { %1381 = vmatprep.subr.bf16.mxu0 %v1721_v3  ;;  %1405 = vmatprep.subr.bf16.mxu1 %v1721_v3  ;;  %147 = vst [vmem:[#allocation2 + $0x38] sm:$0x1] %v145_v17  ;;  %v150_v19 = vld [vmem:[%s149_s29] sm:$0x1] }
  0x5c   :  { %151 = vst [vmem:[#allocation2 + $0x39] sm:$0x1] %v150_v19  ;;  %v762_v29 = vld [vmem:[#allocation10 + $0x50] sm:$0xff]  ;;  %p1691_p3 = pnand %p1690_p2, %p1684_p13 }
  0x5d   :  { %v460_v58 = vld [vmem:[#allocation2 + $0x20] sm:$0xff] }
  0x5e   :  { %1383 = vmatpush3.bf16.msra.mxu0 %v1856_v24  ;;  %1407 = vmatpush3.bf16.msra.mxu1 %v1856_v24  ;;  %v766_v35 = vld [vmem:[#allocation10 + $0x70] sm:$0xff] }
  0x5f   :  { %1384 = vmatprep.subr.bf16.mxu0 %v1721_v3  ;;  %1408 = vmatprep.subr.bf16.mxu1 %v1721_v3  ;;  %v533_v1 = vld [vmem:[#allocation2 + $0x28] sm:$0xff]  ;;  %v894_v43 = vld [vmem:[%s2007_s4] ss:$0 sm:$0xff] }
  0x62   :  { %1386 = vmatpush3.bf16.msra.mxu0 %v1862_v27  ;;  %1410 = vmatpush3.bf16.msra.mxu1 %v1862_v27 }
  0x63   :  { %1411 = vmatprep.subr.bf16.mxu0 %v1721_v3  ;;  %1435 = vmatprep.subr.bf16.mxu1 %v1721_v3 }
  0x65   :  { %1081 = vmatmul.mubr.f32.vlgmr.msra.gmra.mrb[0].mxu0 %v1723_v6 }
  0x66   :  { %1413 = vmatpush3.bf16.msra.mxu0 %v1810_v4  ;;  %1150 = vmatprep.mubr.msk.f32.mxu0 %vm1722_vm0, %v1723_v6 }
  0x67   :  { %1414 = vmatprep.subr.bf16.mxu0 %v1721_v3 }
  0x6a   :  { %1416 = vmatpush3.bf16.msra.mxu0 %v1826_v7 }
  0x6b   :  { %1417 = vmatprep.subr.bf16.mxu0 %v1721_v3 }
  0x6e   :  { %1419 = vmatpush3.bf16.msra.mxu0 %v1832_v10 }
  0x6f   :  { %1420 = vmatprep.subr.bf16.mxu0 %v1721_v3 }
  0x72   :  { %1422 = vmatpush3.bf16.msra.mxu0 %v1838_v15 }
  0x73   :  { %1423 = vmatprep.subr.bf16.mxu0 %v1721_v3 }
  0x76   :  { %1425 = vmatpush3.bf16.msra.mxu0 %v1844_v18 }
  0x77   :  { %1426 = vmatprep.subr.bf16.mxu0 %v1721_v3 }
  0x7a   :  { %1428 = vmatpush3.bf16.msra.mxu0 %v1850_v21 }
  0x7b   :  { %1429 = vmatprep.subr.bf16.mxu0 %v1721_v3 }
  0x7e   :  { %1431 = vmatpush3.bf16.msra.mxu0 %v1856_v24 }
  0x7f   :  { %1432 = vmatprep.subr.bf16.mxu0 %v1721_v3 }
  0x82   :  { %1434 = vmatpush3.bf16.msra.mxu0 %v1862_v27 }
  0x83   :  { %1459 = vmatprep.subr.bf16.mxu0 %v1721_v3 }
 0x138   :  { %v235_v31 = vpop.f32.mrb[0].mxu0 }
 0x139   :  { %v239_v32 = vadd.f32 %v235_v31, %v168_v30  ;;  %v1082_v33 = vpop.f32.mrb[1].mxu0  ;;  %v763_v30 = vld [vmem:[#allocation10 + $0x58] sm:$0xff] }
 0x13a   :  { %v1571_v31 = vpack.c.bf16 %v763_v30, %v762_v29  ;;  %v765_v33 = vld [vmem:[#allocation10 + $0x68] sm:$0xff] }
 0x13b   :  { %1591 = vtanh.f32 %v239_v32  ;;  %v764_v32 = vld [vmem:[#allocation10 + $0x60] sm:$0xff] }
 0x145   :  { %v1592_v34 = vpop.eup %1591 }
 0x146   :  { %1116 = vmatmul.mubr.f32.vlgmr.msra.gmra.mrb[0].mxu1 %v1592_v34  ;;  %v1574_v34 = vpack.c.bf16 %v765_v33, %v764_v32 }
 0x147   :  { %1437 = vmatpush3.bf16.msra.mxu1 %v1810_v4  ;;  %1185 = vmatprep.mubr.msk.f32.mxu1 %vm1722_vm0, %v1723_v6 }
 0x148   :  { %1438 = vmatprep.subr.bf16.mxu1 %v1721_v3 }
 0x14b   :  { %1440 = vmatpush3.bf16.msra.mxu1 %v1826_v7 }
 0x14c   :  { %1441 = vmatprep.subr.bf16.mxu1 %v1721_v3 }
 0x14f   :  { %1443 = vmatpush3.bf16.msra.mxu1 %v1832_v10 }
 0x150   :  { %1444 = vmatprep.subr.bf16.mxu1 %v1721_v3 }
 0x153   :  { %1446 = vmatpush3.bf16.msra.mxu1 %v1838_v15 }
 0x154   :  { %1447 = vmatprep.subr.bf16.mxu1 %v1721_v3 }
 0x157   :  { %1449 = vmatpush3.bf16.msra.mxu1 %v1844_v18 }
 0x158   :  { %1450 = vmatprep.subr.bf16.mxu1 %v1721_v3 }
 0x15b   :  { %1452 = vmatpush3.bf16.msra.mxu1 %v1850_v21 }
 0x15c   :  { %1453 = vmatprep.subr.bf16.mxu1 %v1721_v3 }
 0x15f   :  { %1455 = vmatpush3.bf16.msra.mxu1 %v1856_v24 }
 0x160   :  { %1456 = vmatprep.subr.bf16.mxu1 %v1721_v3 }
 0x163   :  { %1458 = vmatpush3.bf16.msra.mxu1 %v1862_v27 }
 0x164   :  { %1483 = vmatprep.subr.bf16.mxu1 %v1721_v3 }
 0x219   :  { %v308_v38 = vpop.f32.mrb[0].mxu1 }
 0x21a   :  { %v312_v39 = vadd.f32 %v308_v38, %v241_v37  ;;  %v1117_v40 = vpop.f32.mrb[1].mxu1  ;;  %v1577_v37 = vpack.c.bf16 %v767_v36, %v766_v35  ;;  %v679_v38 = vld [vmem:[#allocation2 + $0x38] sm:$0xff] }
 0x21c   :  { %1593 = vtanh.f32 %v312_v39 }
 0x226   :  { %v1594_v41 = vpop.eup %1593 }
 0x227   :  { %1151 = vmatmul.mubr.f32.vlgmr.msra.gmra.mrb[2].mxu0 %v1594_v41 }
 0x228   :  { %1461 = vmatpush3.bf16.msra.mxu0 %v1810_v4  ;;  %1220 = vmatprep.mubr.msk.f32.mxu0 %vm1722_vm0, %v1723_v6 }
 0x229   :  { %1462 = vmatprep.subr.bf16.mxu0 %v1721_v3 }
 0x22c   :  { %1464 = vmatpush3.bf16.msra.mxu0 %v1826_v7 }
 0x22d   :  { %1465 = vmatprep.subr.bf16.mxu0 %v1721_v3 }
 0x230   :  { %1467 = vmatpush3.bf16.msra.mxu0 %v1832_v10 }
 0x231   :  { %1468 = vmatprep.subr.bf16.mxu0 %v1721_v3 }
 0x234   :  { %1470 = vmatpush3.bf16.msra.mxu0 %v1838_v15 }
 0x235   :  { %1471 = vmatprep.subr.bf16.mxu0 %v1721_v3 }
 0x238   :  { %1473 = vmatpush3.bf16.msra.mxu0 %v1844_v18 }
 0x239   :  { %1474 = vmatprep.subr.bf16.mxu0 %v1721_v3 }
 0x23c   :  { %1476 = vmatpush3.bf16.msra.mxu0 %v1850_v21 }
 0x23d   :  { %1477 = vmatprep.subr.bf16.mxu0 %v1721_v3 }
 0x240   :  { %1479 = vmatpush3.bf16.msra.mxu0 %v1856_v24 }
 0x241   :  { %1480 = vmatprep.subr.bf16.mxu0 %v1721_v3 }
 0x244   :  { %1482 = vmatpush3.bf16.msra.mxu0 %v1862_v27 }
 0x245   :  { %1507 = vmatprep.subr.bf16.mxu0 %v1721_v3 }
 0x2fa   :  { %v381_v45 = vpop.f32.mrb[2].mxu0 }
 0x2fb   :  { %v385_v46 = vadd.f32 %v381_v45, %v314_v44  ;;  %v1152_v47 = vpop.f32.mrb[3].mxu0 }
 0x2fd   :  { %1595 = vtanh.f32 %v385_v46 }
 0x307   :  { %v1596_v48 = vpop.eup %1595 }
 0x308   :  { %1186 = vmatmul.mubr.f32.vlgmr.msra.gmra.mrb[2].mxu1 %v1596_v48 }
 0x309   :  { %1485 = vmatpush3.bf16.msra.mxu1 %v1810_v4  ;;  %1255 = vmatprep.mubr.msk.f32.mxu1 %vm1722_vm0, %v1723_v6 }
 0x30a   :  { %1486 = vmatprep.subr.bf16.mxu1 %v1721_v3 }
 0x30d   :  { %1488 = vmatpush3.bf16.msra.mxu1 %v1826_v7 }
 0x30e   :  { %1489 = vmatprep.subr.bf16.mxu1 %v1721_v3 }
 0x311   :  { %1491 = vmatpush3.bf16.msra.mxu1 %v1832_v10 }
 0x312   :  { %1492 = vmatprep.subr.bf16.mxu1 %v1721_v3 }
 0x315   :  { %1494 = vmatpush3.bf16.msra.mxu1 %v1838_v15 }
 0x316   :  { %1495 = vmatprep.subr.bf16.mxu1 %v1721_v3 }
 0x319   :  { %1497 = vmatpush3.bf16.msra.mxu1 %v1844_v18 }
 0x31a   :  { %1498 = vmatprep.subr.bf16.mxu1 %v1721_v3 }
 0x31d   :  { %1500 = vmatpush3.bf16.msra.mxu1 %v1850_v21 }
 0x31e   :  { %1501 = vmatprep.subr.bf16.mxu1 %v1721_v3 }
 0x321   :  { %1503 = vmatpush3.bf16.msra.mxu1 %v1856_v24 }
 0x322   :  { %1504 = vmatprep.subr.bf16.mxu1 %v1721_v3 }
 0x325   :  { %1506 = vmatpush3.bf16.msra.mxu1 %v1862_v27 }
 0x326   :  { %1531 = vmatprep.subr.bf16.mxu1 %v1721_v3 }
 0x3db   :  { %v454_v52 = vpop.f32.mrb[2].mxu1 }
 0x3dc   :  { %v458_v53 = vadd.f32 %v454_v52, %v387_v51  ;;  %v1187_v54 = vpop.f32.mrb[3].mxu1 }
 0x3de   :  { %1597 = vtanh.f32 %v458_v53 }
 0x3e8   :  { %v1598_v55 = vpop.eup %1597 }
 0x3e9   :  { %1221 = vmatmul.mubr.f32.vlgmr.msra.gmra.mrb[4].mxu0 %v1598_v55 }
 0x3ea   :  { %1509 = vmatpush3.bf16.msra.mxu0 %v1810_v4  ;;  %1290 = vmatprep.mubr.msk.f32.mxu0 %vm1722_vm0, %v1723_v6 }
 0x3eb   :  { %1510 = vmatprep.subr.bf16.mxu0 %v1721_v3 }
 0x3ee   :  { %1512 = vmatpush3.bf16.msra.mxu0 %v1826_v7 }
 0x3ef   :  { %1513 = vmatprep.subr.bf16.mxu0 %v1721_v3 }
 0x3f2   :  { %1515 = vmatpush3.bf16.msra.mxu0 %v1832_v10 }
 0x3f3   :  { %1516 = vmatprep.subr.bf16.mxu0 %v1721_v3 }
 0x3f6   :  { %1518 = vmatpush3.bf16.msra.mxu0 %v1838_v15 }
 0x3f7   :  { %1519 = vmatprep.subr.bf16.mxu0 %v1721_v3 }
 0x3fa   :  { %1521 = vmatpush3.bf16.msra.mxu0 %v1844_v18 }
 0x3fb   :  { %1522 = vmatprep.subr.bf16.mxu0 %v1721_v3 }
 0x3fe   :  { %1524 = vmatpush3.bf16.msra.mxu0 %v1850_v21 }
 0x3ff   :  { %1525 = vmatprep.subr.bf16.mxu0 %v1721_v3 }
 0x402   :  { %1527 = vmatpush3.bf16.msra.mxu0 %v1856_v24 }
 0x403   :  { %1528 = vmatprep.subr.bf16.mxu0 %v1721_v3 }
 0x406   :  { %1530 = vmatpush3.bf16.msra.mxu0 %v1862_v27 }
 0x407   :  { %1555 = vmatprep.subr.bf16.mxu0 %v1721_v3 }
 0x4bc   :  { %v527_v59 = vpop.f32.mrb[4].mxu0 }
 0x4bd   :  { %v531_v60 = vadd.f32 %v527_v59, %v460_v58  ;;  %v1222_v61 = vpop.f32.mrb[5].mxu0 }
 0x4bf   :  { %1599 = vtanh.f32 %v531_v60 }
 0x4c9   :  { %v1600_v62 = vpop.eup %1599 }
 0x4ca   :  { %1256 = vmatmul.mubr.f32.vlgmr.msra.gmra.mrb[4].mxu1 %v1600_v62 }
 0x4cb   :  { %1533 = vmatpush3.bf16.msra.mxu1 %v1810_v4  ;;  %1325 = vmatprep.mubr.msk.f32.mxu1 %vm1722_vm0, %v1723_v6 }
 0x4cc   :  { %1534 = vmatprep.subr.bf16.mxu1 %v1721_v3 }
 0x4cf   :  { %1536 = vmatpush3.bf16.msra.mxu1 %v1826_v7 }
 0x4d0   :  { %1537 = vmatprep.subr.bf16.mxu1 %v1721_v3 }
 0x4d3   :  { %1539 = vmatpush3.bf16.msra.mxu1 %v1832_v10  ;;  %v754_v10 = vld [vmem:[#allocation10 + $0x10] sm:$0xff] }
 0x4d4   :  { %1540 = vmatprep.subr.bf16.mxu1 %v1721_v3  ;;  %v1559_v13 = vpack.c.bf16 %v755_v12, %v754_v10 }
 0x4d7   :  { %1542 = vmatpush3.bf16.msra.mxu1 %v1838_v15  ;;  %v757_v15 = vld [vmem:[#allocation10 + $0x28] sm:$0xff] }
 0x4d8   :  { %1543 = vmatprep.subr.bf16.mxu1 %v1721_v3  ;;  %v1562_v16 = vpack.c.bf16 %v757_v15, %v756_v14 }
 0x4db   :  { %1545 = vmatpush3.bf16.msra.mxu1 %v1844_v18  ;;  %v759_v18 = vld [vmem:[#allocation10 + $0x38] sm:$0xff] }
 0x4dc   :  { %1546 = vmatprep.subr.bf16.mxu1 %v1721_v3 }
 0x4df   :  { %1548 = vmatpush3.bf16.msra.mxu1 %v1850_v21  ;;  %v760_v21 = vld [vmem:[#allocation10 + $0x40] sm:$0xff] }
 0x4e0   :  { %1549 = vmatprep.subr.bf16.mxu1 %v1721_v3  ;;  %v1568_v23 = vpack.c.bf16 %v761_v22, %v760_v21 }
 0x4e3   :  { %1551 = vmatpush3.bf16.msra.mxu1 %v1856_v24  ;;  %v606_v24 = vld [vmem:[#allocation2 + $0x30] sm:$0xff] }
 0x4e4   :  { %1552 = vmatprep.subr.bf16.mxu1 %v1721_v3 }
 0x4e7   :  { %1554 = vmatpush3.bf16.msra.mxu1 %v1862_v27 }
 0x59d   :  { %v600_v2 = vpop.f32.mrb[4].mxu1 }
 0x59e   :  { %v604_v4 = vadd.f32 %v600_v2, %v533_v1  ;;  %v1257_v5 = vpop.f32.mrb[5].mxu1 }
 0x5a0   :  { %1601 = vtanh.f32 %v604_v4 }
 0x5aa   :  { %v1602_v7 = vpop.eup %1601 }
 0x5ab   :  { %1291 = vmatmul.mubr.f32.vlgmr.msra.gmra.mrb[6].mxu0 %v1602_v7 }
 0x5ac   :  { %1360 = vmatprep.mubr.msk.f32.mxu0 %vm1722_vm0, %v1723_v6  ;;  %1557 = vmatpush3.bf16.msra.mxu0 %v1556_v11  ;;  %v758_v6 = vld [vmem:[#allocation10 + $0x30] sm:$0xff] }
 0x5ad   :  { %1558 = vmatprep.subr.bf16.mxu0 %v1721_v3  ;;  %v1565_v20 = vpack.c.bf16 %v759_v18, %v758_v6 }
 0x5b0   :  { %1560 = vmatpush3.bf16.msra.mxu0 %v1559_v13 }
 0x5b1   :  { %1561 = vmatprep.subr.bf16.mxu0 %v1721_v3 }
 0x5b4   :  { %1563 = vmatpush3.bf16.msra.mxu0 %v1562_v16 }
 0x5b5   :  { %1564 = vmatprep.subr.bf16.mxu0 %v1721_v3 }
 0x5b8   :  { %1566 = vmatpush3.bf16.msra.mxu0 %v1565_v20 }
 0x5b9   :  { %1567 = vmatprep.subr.bf16.mxu0 %v1721_v3 }
 0x5bc   :  { %1569 = vmatpush3.bf16.msra.mxu0 %v1568_v23 }
 0x5bd   :  { %1570 = vmatprep.subr.bf16.mxu0 %v1721_v3 }
 0x5c0   :  { %1572 = vmatpush3.bf16.msra.mxu0 %v1571_v31 }
 0x5c1   :  { %1573 = vmatprep.subr.bf16.mxu0 %v1721_v3 }
 0x5c4   :  { %1575 = vmatpush3.bf16.msra.mxu0 %v1574_v34 }
 0x5c5   :  { %1576 = vmatprep.subr.bf16.mxu0 %v1721_v3 }
 0x5c8   :  { %1578 = vmatpush3.bf16.msra.mxu0 %v1577_v37 }
 0x67e   :  { %v673_v25 = vpop.f32.mrb[6].mxu0 }
 0x67f   :  { %v677_v26 = vadd.f32 %v673_v25, %v606_v24  ;;  %v1292_v27 = vpop.f32.mrb[7].mxu0 }
 0x681   :  { %1603 = vtanh.f32 %v677_v26 }
 0x68b   :  { %v1604_v28 = vpop.eup %1603 }
 0x68c   :  { %1326 = vmatmul.mubr.f32.vlgmr.msra.gmra.mrb[6].mxu1 %v1604_v28 }
 0x75f   :  { %v746_v39 = vpop.f32.mrb[6].mxu1 }
 0x760   :  { %v750_v40 = vadd.f32 %v746_v39, %v679_v38  ;;  %v1327_v41 = vpop.f32.mrb[7].mxu1 }
 0x762   :  { %1605 = vtanh.f32 %v750_v40 }
 0x76c   :  { %v1606_v42 = vpop.eup %1605 }
 0x76d   :  { %1361 = vmatmul.mubr.f32.vlgmr.msra.gmra.mrb[8].mxu0 %v1606_v42 }
 0x840   :  { %v841_v44 = vpop.f32.mrb[8].mxu0 }
 0x841   :  { %v842_v45 = vadd.f32 %v894_v43, %v841_v44  ;;  %v1362_v46 = vpop.f32.mrb[9].mxu0 }
 0x843   :  { %845 = vst [vmem:[#allocation11] sm:$0xff] %v842_v45 }
 0x844   :  { %1694 = shalt.err (!%p1691_p3)
}
 0x845   :  { %s1695_s23 = scalar_lea.hbm %s2008_s5, 128 }
 0x846   :  { %p1696_p4 = scmp.ne.s32.totalorder %s2008_s5, %s1695_s23  ;;  %p1699_p5 = scmp.lt.u32.totalorder %s1695_s23, %s2008_s5 }
 0x848   :  { %p1701_p6 = pnand %p1699_p5, %p1696_p4 }
 0x84a   :  { %1704 = shalt.err (!%p1701_p6)
}
 0x84b   :  { %855 = dma.vmem_to_hbm [thread:$0]  %s853_s19, 128, %s2008_s5, [#allocation5]  }
 0x84c   :  { %1711 = dma.done.wait [#allocation5], 128  }
 0x84d   :  { %1712 = vsyncadd [#allocation5], 4294967168 }
 0x84e   :  { %859 = vsyncpa [#allocation4], 1 }
 0x84f   :  { %860 = vsyncpa [#allocation9], 1 }
 0x850   :  { %861 = vsyncpa [#allocation5], 1 }
 0x851   :  { %862 = vsyncpa [#allocation6], 1 }

</bundles_post_ra>
